<compile_context>
chip_gen: v5e
topology: v5e:2x2
jax: 0.10.0
libtpu: 0.0.40
codegen_flags: <defaults>
</compile_context>

<pallas_src>
import functools

import jax
import jax.numpy as jnp
from jax.experimental import pallas as pl
from jax.experimental.pallas import tpu as pltpu


# ----------------------------------------------------------------------------
# Kernels
# ----------------------------------------------------------------------------

def _se_fused_kernel(x_ref, w1t_ref, w2t_ref, o_ref):
    """Single-pass SE over one batch block.

    x_ref  : (Bt, C, HW) input block, native dtype
    w1t_ref: (C, Cr)     fc1 weight, (in, out) layout
    w2t_ref: (Cr, C)     fc2 weight, (in, out) layout
    o_ref  : (Bt, C, HW) output block
    """
    hw = x_ref.shape[-1]

    # Squeeze: spatial mean with f32 accumulation (no full-tile f32 copy).
    y = jnp.sum(x_ref[...], axis=-1, dtype=jnp.float32) * (1.0 / hw)  # (Bt, C)

    # Excitation: Linear -> ReLU -> Linear -> Sigmoid on the MXU.
    h = jnp.maximum(
        jnp.dot(y, w1t_ref[...].astype(jnp.float32),
                preferred_element_type=jnp.float32), 0.0)             # (Bt, Cr)
    logits = jnp.dot(h, w2t_ref[...].astype(jnp.float32),
                     preferred_element_type=jnp.float32)              # (Bt, C)
    s = jax.nn.sigmoid(logits)                                        # (Bt, C)

    # Scale: re-read x from VMEM; keep the big multiply in the native dtype.
    o_ref[...] = x_ref[...] * s.astype(o_ref.dtype)[:, :, None]


def _se_gate_kernel(x_ref, w1t_ref, w2t_ref, s_ref, acc_ref, *, inv_hw):
    """Pass 1 of the HW-tiled fallback: pool (accumulated over HW tiles) +
    excitation, writing per-(batch, channel) gates.

    grid = (batch [parallel], hw_tiles [arbitrary])
    x_ref  : (1, C, HWt)
    s_ref  : (1, C, 1)  f32 gate output
    acc_ref: (1, C)     f32 scratch accumulator
    """
    hw_id = pl.program_id(1)

    @pl.when(hw_id == 0)
    def _():
        acc_ref[...] = jnp.zeros_like(acc_ref)

    acc_ref[...] += jnp.sum(x_ref[...], axis=-1, dtype=jnp.float32)

    @pl.when(hw_id == pl.num_programs(1) - 1)
    def _():
        y = acc_ref[...] * inv_hw                                     # (1, C)
        h = jnp.maximum(
            jnp.dot(y, w1t_ref[...].astype(jnp.float32),
                    preferred_element_type=jnp.float32), 0.0)         # (1, Cr)
        logits = jnp.dot(h, w2t_ref[...].astype(jnp.float32),
                         preferred_element_type=jnp.float32)          # (1, C)
        s_ref[...] = jax.nn.sigmoid(logits)[:, :, None]               # (1, C, 1)


def _se_scale_kernel(x_ref, s_ref, o_ref):
    """Pass 2 of the fallback: per-channel rescale of one (1, C, HWt) tile."""
    o_ref[...] = x_ref[...] * s_ref[...].astype(o_ref.dtype)


# ----------------------------------------------------------------------------
# Tiling policy
# ----------------------------------------------------------------------------

def _tpu_memory_params():
    """(VMEM capacity bytes, TensorCore count) with conservative fallbacks."""
    vmem_bytes = 64 << 20      # conservative (v7x-sized) default
    num_cores = 0
    try:
        info = pltpu.get_tpu_info()
        vmem_bytes = int(getattr(info, "vmem_capacity_bytes", vmem_bytes))
        for attr in ("num_cores", "tensorcore_count", "num_tensorcores",
                     "core_count"):
            v = getattr(info, attr, None)
            if isinstance(v, int) and v > 0:
                num_cores = v
                break
    except Exception:
        pass
    if num_cores <= 0:
        # Heuristic: only v7x (2 TCs/chip) has <= 64 MiB VMEM per TensorCore.
        num_cores = 2 if vmem_bytes <= (64 << 20) else 1
    return vmem_bytes, num_cores


def _pick_batch_block(batch, bytes_per_elem, target_bytes, min_grid):
    """Largest divisor Bt of batch with Bt*bytes_per_elem <= target_bytes,
    preferring choices that leave >= min_grid grid steps.  Returns 0 if even
    Bt=1 does not fit (caller uses the HW-tiled fallback)."""
    if bytes_per_elem > target_bytes:
        return 0
    best = 1
    for bt in range(1, batch + 1):
        if batch % bt:
            continue
        if bt * bytes_per_elem > target_bytes:
            break
        if batch // bt >= min_grid or batch < min_grid:
            best = bt
    return best


def _pick_hw_block(hw, bytes_per_col, target_bytes):
    """Largest divisor of hw that fits target_bytes, preferring multiples of
    128 (lane-dense, tiling-legal).  Returns 0 if nothing fits."""
    best_128 = 0
    best_any = 0
    for t in range(1, hw + 1):
        if hw % t:
            continue
        if t * bytes_per_col > target_bytes:
            break
        best_any = t
        if t % 128 == 0:
            best_128 = t
    return best_128 if best_128 else best_any


def _vmem_limit(block_bytes, w_bytes, vmem_bytes):
    # Input + output, each double-buffered -> 4 live block copies, plus
    # weights (double-buffered) and compiler scratch headroom.
    need = 4 * block_bytes + 4 * w_bytes + (2 << 20)
    return int(min(max(need, 16 << 20), vmem_bytes - (8 << 20)))


# ----------------------------------------------------------------------------
# pallas_call wrappers
# ----------------------------------------------------------------------------

def _se_fused(x_flat, w1t, w2t, Bt, vmem_bytes, w_bytes, donate_x):
    B, C, HW = x_flat.shape
    Cr = w1t.shape[1]
    itemsize = x_flat.dtype.itemsize
    block_bytes = Bt * C * HW * itemsize
    vmem_limit = _vmem_limit(block_bytes, w_bytes, vmem_bytes)

    cost = pl.CostEstimate(
        flops=2 * B * C * HW + 4 * B * C * Cr,        # pool + scale + tiny MLP
        transcendentals=B * C,                        # sigmoid
        bytes_accessed=2 * B * C * HW * itemsize + 2 * w_bytes,
    )

    return pl.pallas_call(
        _se_fused_kernel,
        out_shape=jax.ShapeDtypeStruct((B, C, HW), x_flat.dtype),
        grid_spec=pltpu.PrefetchScalarGridSpec(
            num_scalar_prefetch=0,
            grid=(B // Bt,),
            in_specs=[
                pl.BlockSpec((Bt, C, HW), lambda b: (b, 0, 0)),
                pl.BlockSpec((C, Cr), lambda b: (0, 0)),
                pl.BlockSpec((Cr, C), lambda b: (0, 0)),
            ],
            out_specs=pl.BlockSpec((Bt, C, HW), lambda b: (b, 0, 0)),
        ),
        compiler_params=pltpu.CompilerParams(
            dimension_semantics=("parallel",),
            vmem_limit_bytes=vmem_limit,
        ),
        input_output_aliases={0: 0} if donate_x else {},
        cost_estimate=cost,
    )(x_flat, w1t, w2t)


def _se_two_pass(x_flat, w1t, w2t, HWt, vmem_bytes, w_bytes, donate_x):
    """Fallback when one batch element exceeds the block budget: tile HW and
    run (pool + excite) then (scale), each fully pipelined."""
    B, C, HW = x_flat.shape
    Cr = w1t.shape[1]
    itemsize = x_flat.dtype.itemsize
    n_hw = HW // HWt
    block_bytes = C * HWt * itemsize
    vmem_limit = _vmem_limit(block_bytes, w_bytes, vmem_bytes)

    gate_cost = pl.CostEstimate(
        flops=B * C * HW + 4 * B * C * Cr,
        transcendentals=B * C,
        bytes_accessed=B * C * HW * itemsize + B * C * 4 + 2 * w_bytes,
    )
    s = pl.pallas_call(
        functools.partial(_se_gate_kernel, inv_hw=1.0 / HW),
        out_shape=jax.ShapeDtypeStruct((B, C, 1), jnp.float32),
        grid_spec=pltpu.PrefetchScalarGridSpec(
            num_scalar_prefetch=0,
            grid=(B, n_hw),
            in_specs=[
                pl.BlockSpec((1, C, HWt), lambda b, h: (b, 0, h)),
                pl.BlockSpec((C, Cr), lambda b, h: (0, 0)),
                pl.BlockSpec((Cr, C), lambda b, h: (0, 0)),
            ],
            out_specs=pl.BlockSpec((1, C, 1), lambda b, h: (b, 0, 0)),
            scratch_shapes=[pltpu.VMEM((1, C), jnp.float32)],
        ),
        compiler_params=pltpu.CompilerParams(
            dimension_semantics=("parallel", "arbitrary"),
            vmem_limit_bytes=vmem_limit,
        ),
        cost_estimate=gate_cost,
    )(x_flat, w1t, w2t)

    scale_cost = pl.CostEstimate(
        flops=B * C * HW,
        transcendentals=0,
        bytes_accessed=2 * B * C * HW * itemsize + B * C * 4,
    )
    return pl.pallas_call(
        _se_scale_kernel,
        out_shape=jax.ShapeDtypeStruct((B, C, HW), x_flat.dtype),
        grid_spec=pltpu.PrefetchScalarGridSpec(
            num_scalar_prefetch=0,
            grid=(B, n_hw),
            in_specs=[
                pl.BlockSpec((1, C, HWt), lambda b, h: (b, 0, h)),
                pl.BlockSpec((1, C, 1), lambda b, h: (b, 0, 0)),
            ],
            out_specs=pl.BlockSpec((1, C, HWt), lambda b, h: (b, 0, h)),
        ),
        compiler_params=pltpu.CompilerParams(
            dimension_semantics=("parallel", "parallel"),
            vmem_limit_bytes=vmem_limit,
        ),
        input_output_aliases={0: 0} if donate_x else {},
        cost_estimate=scale_cost,
    )(x_flat, s)


def se_layer(x, w1, w2, *, donate_x=False, _force_two_pass=False):
    """Squeeze-and-Excitation forward (matches the PyTorch SELayer).

    x  : (B, C, H, W)
    w1 : (C // r, C)   first Linear weight (PyTorch (out, in), no bias)
    w2 : (C, C // r)   second Linear weight (PyTorch (out, in), no bias)
    donate_x: if True, alias the output onto x's HBM buffer.  The caller must
              NOT read x after this call.
    """
    B, C, H, W = x.shape
    HW = H * W
    Cr = w1.shape[0]
    assert w1.shape == (Cr, C) and w2.shape == (C, Cr)

    x_flat = x.reshape(B, C, HW)     # free reshape (row-major NCHW)
    w1t = w1.T                       # (C, Cr): (in, out) layout for the MXU
    w2t = w2.T                       # (Cr, C)

    itemsize = x.dtype.itemsize
    bytes_per_batch = C * HW * itemsize
    w_bytes = w1.size * w1.dtype.itemsize + w2.size * w2.dtype.itemsize

    vmem_bytes, num_cores = _tpu_memory_params()
    # Block budget: ~VMEM/8 (4 double-buffered block copies stay < VMEM/2),
    # capped at 16 MiB where per-step overhead is already negligible.
    target_bytes = min(16 << 20, max(1 << 20, vmem_bytes // 8))
    min_grid = 2 if num_cores >= 2 else 1

    Bt = _pick_batch_block(B, bytes_per_batch, target_bytes, min_grid)

    if _force_two_pass or Bt == 0:
        HWt = _pick_hw_block(HW, C * itemsize, target_bytes)
        if _force_two_pass and HW % 128 == 0 and HW > 128:
            HWt = 128                       # force a multi-step HW grid (test)
        two_pass_ok = (HWt > 0 and (HWt == HW or HWt % 128 == 0)
                       and HW % HWt == 0)
        if two_pass_ok and (HWt < HW or _force_two_pass):
            out_flat = _se_two_pass(x_flat, w1t, w2t, HWt, vmem_bytes,
                                    w_bytes, donate_x)
            return out_flat.reshape(B, C, H, W)
        # TODO(synk): no 128-aligned HW tiling fits VMEM for this shape; fall
        # back to the fused path with Bt=1 (may lose pipelining on v7x).
        Bt = 1

    out_flat = _se_fused(x_flat, w1t, w2t, Bt, vmem_bytes, w_bytes, donate_x)
    return out_flat.reshape(B, C, H, W)


# ----------------------------------------------------------------------------
# Reference + test
# ----------------------------------------------------------------------------

def _reference(x, w1, w2):
    y = jnp.mean(x, axis=(2, 3))                  # (B, C)
    h = jnp.maximum(y @ w1.T, 0.0)                # (B, Cr)
    s = jax.nn.sigmoid(h @ w2.T)                  # (B, C)
    return x * s[:, :, None, None]


if __name__ == "__main__":
    # SELayer(channel=64, reduction=16); HW = 16*16 = 256 (lane-dense).
    B, C, H, W = 8, 64, 16, 16
    reduction = 16
    Cr = C // reduction  # 4

    key = jax.random.PRNGKey(0)
    kx, k1, k2 = jax.random.split(key, 3)

    x = jax.random.normal(kx, (B, C, H, W), dtype=jnp.float32)
    # PyTorch Linear convention: (out, in), no bias.
    w1 = jax.random.normal(k1, (Cr, C), dtype=jnp.float32) * (1.0 / jnp.sqrt(C))
    w2 = jax.random.normal(k2, (C, Cr), dtype=jnp.float32) * (1.0 / jnp.sqrt(Cr))

    ref = _reference(x, w1, w2)

    # Main fused single-pass path.
    out = jax.block_until_ready(jax.jit(se_layer)(x, w1, w2))
    assert out.shape == (B, C, H, W)
    assert jnp.allclose(out, ref, atol=1e-5, rtol=1e-5), "fused path mismatch"

    # Also exercise the HW-tiled two-pass fallback (HW=256 -> 2 x 128 tiles).
    out2 = jax.block_until_ready(
        jax.jit(functools.partial(se_layer, _force_two_pass=True))(x, w1, w2))
    assert jnp.allclose(out2, ref, atol=1e-5, rtol=1e-5), "fallback mismatch"

    print("KERNEL_OK")
</pallas_src>

<mosaic_0001>
module attributes {stable_mosaic.version = 11 : i64} {
  func.func @_se_fused_kernel(%arg0: i32, %arg1: memref<4x64x256xf32, #tpu.memory_space<vmem>>, %arg2: memref<64x4xf32, #tpu.memory_space<vmem>>, %arg3: memref<4x64xf32, #tpu.memory_space<vmem>>, %arg4: memref<4x64x256xf32, #tpu.memory_space<vmem>>) attributes {dimension_semantics = [#tpu.dimension_semantics<parallel>], iteration_bounds = array<i64: 2>, scalar_prefetch = 0 : i64, scratch_operands = 0 : i64, tpu.core_type = #tpu.core_type<tc>, window_params = [{transform_indices = @transform_0, window_bounds = array<i64: 4, 64, 256>}, {pipeline_mode = #tpu.pipeline_mode<synchronous>, transform_indices = @transform_1, window_bounds = array<i64: 64, 4>}, {pipeline_mode = #tpu.pipeline_mode<synchronous>, transform_indices = @transform_2, window_bounds = array<i64: 4, 64>}, {transform_indices = @transform_3, window_bounds = array<i64: 4, 64, 256>}]} {
    %c0 = arith.constant 0 : index
    %c0_0 = arith.constant 0 : index
    %c0_1 = arith.constant 0 : index
    %0 = vector.load %arg1[%c0, %c0_0, %c0_1] : memref<4x64x256xf32, #tpu.memory_space<vmem>>, vector<4x64x256xf32>
    %cst = arith.constant dense<0.000000e+00> : vector<4x64xf32>
    %1 = vector.multi_reduction <add>, %0, %cst [2] : vector<4x64x256xf32> to vector<4x64xf32>
    %cst_2 = arith.constant 3.906250e-03 : f32
    %2 = vector.broadcast %cst_2 : f32 to vector<4x64xf32>
    %3 = arith.mulf %1, %2 : vector<4x64xf32>
    %c0_3 = arith.constant 0 : index
    %c0_4 = arith.constant 0 : index
    %4 = vector.load %arg2[%c0_3, %c0_4] : memref<64x4xf32, #tpu.memory_space<vmem>>, vector<64x4xf32>
    %cst_5 = arith.constant dense<0.000000e+00> : vector<4x4xf32>
    %5 = tpu.matmul %3, %4, %cst_5 {dimension_numbers = #tpu.dot_dimension_numbers<[1], [0], [0], [1], [0, 0, 1, 1], [], []>} : vector<4x64xf32>, vector<64x4xf32>, vector<4x4xf32> -> vector<4x4xf32>
    %cst_6 = arith.constant 0.000000e+00 : f32
    %6 = vector.broadcast %cst_6 : f32 to vector<4x4xf32>
    %7 = arith.maximumf %5, %6 : vector<4x4xf32>
    %c0_7 = arith.constant 0 : index
    %c0_8 = arith.constant 0 : index
    %8 = vector.load %arg3[%c0_7, %c0_8] : memref<4x64xf32, #tpu.memory_space<vmem>>, vector<4x64xf32>
    %cst_9 = arith.constant dense<0.000000e+00> : vector<4x64xf32>
    %9 = tpu.matmul %7, %8, %cst_9 {dimension_numbers = #tpu.dot_dimension_numbers<[1], [0], [0], [1], [0, 0, 1, 1], [], []>} : vector<4x4xf32>, vector<4x64xf32>, vector<4x64xf32> -> vector<4x64xf32>
    %10 = arith.negf %9 : vector<4x64xf32>
    %11 = math.exp %10 : vector<4x64xf32>
    %cst_10 = arith.constant 1.000000e+00 : f32
    %12 = vector.broadcast %cst_10 : f32 to vector<4x64xf32>
    %13 = arith.addf %12, %11 : vector<4x64xf32>
    %14 = arith.divf %12, %13 : vector<4x64xf32>
    %c0_11 = arith.constant 0 : index
    %c0_12 = arith.constant 0 : index
    %c0_13 = arith.constant 0 : index
    %15 = vector.load %arg1[%c0_11, %c0_12, %c0_13] : memref<4x64x256xf32, #tpu.memory_space<vmem>>, vector<4x64x256xf32>
    %16 = vector.shape_cast %14 : vector<4x64xf32> to vector<4x64x1xf32>
    %17 = vector.broadcast %16 : vector<4x64x1xf32> to vector<4x64x256xf32>
    %18 = arith.mulf %15, %17 : vector<4x64x256xf32>
    %c0_14 = arith.constant 0 : index
    %c0_15 = arith.constant 0 : index
    %c0_16 = arith.constant 0 : index
    %19 = vector.load %arg4[%c0_14, %c0_15, %c0_16] : memref<4x64x256xf32, #tpu.memory_space<vmem>>, vector<4x64x256xf32>
    tpu.vector_store %arg4[%c0_14, %c0_15, %c0_16], %18 {strides = array<i32>} : memref<4x64x256xf32, #tpu.memory_space<vmem>>, vector<4x64x256xf32>,
    return
  }
  func.func @transform_0(%arg0: i32) -> (i32, i32, i32) {
    %c0_i32 = arith.constant 0 : i32
    %c0_i32_0 = arith.constant 0 : i32
    %c0_i32_1 = arith.constant 0 : i32
    return %arg0, %c0_i32, %c0_i32_0 : i32, i32, i32
  }
  func.func @transform_1(%arg0: i32) -> (i32, i32) {
    %c0_i32 = arith.constant 0 : i32
    %c0_i32_0 = arith.constant 0 : i32
    %c0_i32_1 = arith.constant 0 : i32
    return %c0_i32, %c0_i32_0 : i32, i32
  }
  func.func @transform_2(%arg0: i32) -> (i32, i32) {
    %c0_i32 = arith.constant 0 : i32
    %c0_i32_0 = arith.constant 0 : i32
    %c0_i32_1 = arith.constant 0 : i32
    return %c0_i32, %c0_i32_0 : i32, i32
  }
  func.func @transform_3(%arg0: i32) -> (i32, i32, i32) {
    %c0_i32 = arith.constant 0 : i32
    %c0_i32_0 = arith.constant 0 : i32
    %c0_i32_1 = arith.constant 0 : i32
    return %arg0, %c0_i32, %c0_i32_0 : i32, i32, i32
  }
}

</mosaic_0001>

<bundles_post_ra>
// kernel: se_layer.1
= control target key start
LH: loop header
LB: loop body
LE: loop exit
PB: predicated region body
PF: predicated region fallthrough
CT: control target
= control target key end

     0   :  { %s1039_s12 = smov 0   ;;  %s1660_s0 = inlined_call_operand.vmem [shape: f32[8,64,256], index: 0, kind: input, shape index: {}]   ;;  %s1661_s1 = inlined_call_operand.vmem [shape: f32[64,4], index: 1, kind: input, shape index: {}]   ;;  %s1662_s2 = inlined_call_operand.vmem [shape: f32[4,64], index: 2, kind: input, shape index: {}]   ;;  %s1663_s3 = inlined_call_operand.vmem [shape: f32[8,64,256], index: 3, kind: output, shape index: {}]  }
   0x1 LB: > { %s947_s13 = sadd.s32 4294967295, %s1017_s12   ;;  %p951_p0 = scmp.ge.s32.totalorder %s1017_s12, 1  ;;  %s1017_s12 = sphi %s1039_s12, %s13_s12  }
   0x2   : > { %p139_p1 = scmp.lt.s32.totalorder %s1017_s12, 3 }
   0x4   : > { %p140_p2 = pnand %p951_p0, %p139_p1 }
   0x6   : > { %143 = sbr.rel (%p140_p2) target bundleno = 813 (0x32d), region = 32 }
   0xb   : > { %s952_s14 = sshll.u32 %s947_s13, 2  ;;  %vm416_vm0 = vcmask 130112   ;;  %vm420_vm1 = vcmask 195712   ;;  %vm424_vm2 = vcmask 261312   ;;  %vm428_vm3 = vcmask 326912  }
   0xc   : > { %p166_p3 = scmp.lt.s32.totalorder %s952_s14, 7  ;;  %vm432_vm4 = vcmask 392512   ;;  %vm436_vm5 = vcmask 458112   ;;  %vm440_vm6 = vcmask 523712   ;;  %vm487_vm7 = vcmask 1041409  }
   0xd   : > { %vm489_vm8 = vcmask 1042434   ;;  %vm491_vm9 = vcmask 1043459   ;;  %vm493_vm10 = vcmask 523264   ;;  %vm522_vm11 = vcmask 1043456  }
   0xe   : > { %s1790_s14 = smov (!%p166_p3, %s952_s14), 7  ;;  %vm518_vm12 = vcmask 31744  }
   0xf   : > { %s964_s15 = sshll.u32 %s1790_s14, 7 }
  0x10   : > { %s1055_s18 = scalar_lea.vmem %s1660_s0, %s964_s15  ;;  %s1503_s13 = scalar_lea.vmem %s1663_s3, %s964_s15 }
  0x11   : > { %v1058_v0 = vld [vmem:[%s1055_s18 + $0x80] sm:$0xff]  ;;  %v1061_v1 = vld [vmem:[%s1055_s18 + $0x88] sm:$0xff]  ;;  %v1082_v9 = vld [vmem:[%s1055_s18 + $0x90] sm:$0xff] }
  0x12   : > { %v1064_v2 = vld [vmem:[%s1055_s18 + $0x20] sm:$0xff]  ;;  %v267_v3 = vadd.f32 %v1061_v1, %v1058_v0  ;;  %v1069_v4 = vld [vmem:[%s1055_s18 + $0x28] sm:$0xff]  ;;  %v1085_v10 = vld [vmem:[%s1055_s18 + $0x98] sm:$0xff] }
  0x13   : > { %v1072_v5 = vld [vmem:[%s1055_s18] sm:$0xff]  ;;  %v1075_v6 = vld [vmem:[%s1055_s18 + $0x8] sm:$0xff]  ;;  %v249_v7 = vadd.f32 %v1069_v4, %v1064_v2  ;;  %v1094_v13 = vld [vmem:[%s1055_s18 + $0x10] sm:$0xff]  ;;  %v270_v15 = vadd.f32 %v1085_v10, %v1082_v9 }
  0x14   : > { %v243_v8 = vadd.f32 %v1075_v6, %v1072_v5  ;;  %268 = vadd.xlane.f32.xlu1 %v267_v3  ;;  %v1088_v11 = vld [vmem:[%s1055_s18 + $0xa0] sm:$0xff]  ;;  %v1091_v12 = vld [vmem:[%s1055_s18 + $0xa8] sm:$0xff]  ;;  %v1097_v14 = vld [vmem:[%s1055_s18 + $0x18] sm:$0xff] }
  0x15   : > { %250 = vadd.xlane.f32.xlu2 %v249_v7  ;;  %1706 = vst [vmem:[#allocation2_spill] sm:$0xff] %v1091_v12  ;;  %v273_v16 = vadd.f32 %v1091_v12, %v1088_v11  ;;  %v246_v17 = vadd.f32 %v1097_v14, %v1094_v13  ;;  %v1106_v18 = vld [vmem:[%s1055_s18 + $0x110] sm:$0xff]  ;;  %v1109_v19 = vld [vmem:[%s1055_s18 + $0x118] sm:$0xff]  ;;  %v1118_v22 = vld [vmem:[%s1055_s18 + $0x100] sm:$0xff] }
  0x16   : > { %244 = vadd.xlane.f32.xlu0 %v243_v8  ;;  %1707 = vst [vmem:[#allocation3_spill] sm:$0xff] %v1106_v18  ;;  %v1112_v20 = vld [vmem:[%s1055_s18 + $0x30] sm:$0xff]  ;;  %v1115_v21 = vld [vmem:[%s1055_s18 + $0x38] sm:$0xff]  ;;  %v1121_v23 = vld [vmem:[%s1055_s18 + $0x108] sm:$0xff]  ;;  %v294_v24 = vadd.f32 %v1109_v19, %v1106_v18 }
  0x17   : > { %1708 = vst [vmem:[#allocation4_spill] sm:$0xff] %v1109_v19  ;;  %v252_v25 = vadd.f32 %v1115_v21, %v1112_v20  ;;  %v291_v26 = vadd.f32 %v1121_v23, %v1118_v22  ;;  %v1130_v27 = vld [vmem:[%s1055_s18 + $0x120] sm:$0xff]  ;;  %v1133_v28 = vld [vmem:[%s1055_s18 + $0x128] sm:$0xff]  ;;  %v1142_v31 = vld [vmem:[%s1055_s18 + $0xb0] sm:$0xff] }
  0x18   : > { %1709 = vst [vmem:[#allocation5_spill] sm:$0xff] %v1118_v22  ;;  %v1136_v29 = vld [vmem:[%s1055_s18 + $0x180] sm:$0xff]  ;;  %v1139_v30 = vld [vmem:[%s1055_s18 + $0x188] sm:$0xff]  ;;  %v1145_v32 = vld [vmem:[%s1055_s18 + $0xb8] sm:$0xff]  ;;  %v297_v33 = vadd.f32 %v1133_v28, %v1130_v27 }
  0x19   : > { %1710 = vst [vmem:[#allocation6_spill] sm:$0xff] %v1121_v23  ;;  %v315_v34 = vadd.f32 %v1139_v30, %v1136_v29  ;;  %v276_v35 = vadd.f32 %v1145_v32, %v1142_v31  ;;  %v1154_v36 = vld [vmem:[%s1055_s18 + $0x40] sm:$0xff]  ;;  %v1157_v37 = vld [vmem:[%s1055_s18 + $0x48] sm:$0xff]  ;;  %v1166_v40 = vld [vmem:[%s1055_s18 + $0x190] sm:$0xff] }
  0x1a   : > { %1711 = vst [vmem:[#allocation7_spill] sm:$0xff] %v1130_v27  ;;  %v1160_v38 = vld [vmem:[%s1055_s18 + $0xc0] sm:$0xff]  ;;  %v1163_v39 = vld [vmem:[%s1055_s18 + $0xc8] sm:$0xff]  ;;  %v1169_v41 = vld [vmem:[%s1055_s18 + $0x198] sm:$0xff]  ;;  %v255_v42 = vadd.f32 %v1157_v37, %v1154_v36 }
  0x1b   : > { %1712 = vst [vmem:[#allocation8_spill] sm:$0xff] %v1133_v28  ;;  %v279_v43 = vadd.f32 %v1163_v39, %v1160_v38  ;;  %v318_v44 = vadd.f32 %v1169_v41, %v1166_v40  ;;  %v1178_v45 = vld [vmem:[%s1055_s18 + $0x1a0] sm:$0xff]  ;;  %v1181_v46 = vld [vmem:[%s1055_s18 + $0x1a8] sm:$0xff]  ;;  %v1184_v47 = vld [vmem:[%s1055_s18 + $0x50] sm:$0xff] }
  0x1c   : > { %271 = vadd.xlane.f32.xlu1 %v270_v15  ;;  %1713 = vst [vmem:[#allocation9_spill] sm:$0xff] %v1136_v29  ;;  %v1187_v48 = vld [vmem:[%s1055_s18 + $0x58] sm:$0xff]  ;;  %v1190_v49 = vld [vmem:[%s1055_s18 + $0x130] sm:$0xff]  ;;  %v321_v51 = vadd.f32 %v1181_v46, %v1178_v45  ;;  %v1202_v54 = vld [vmem:[%s1055_s18 + $0x140] sm:$0xff] }
  0x1d   : > { %274 = vadd.xlane.f32.xlu2 %v273_v16  ;;  %1714 = vst [vmem:[#allocation10_spill] sm:$0xff] %v1139_v30  ;;  %v1193_v50 = vld [vmem:[%s1055_s18 + $0x138] sm:$0xff]  ;;  %v258_v52 = vadd.f32 %v1187_v48, %v1184_v47  ;;  %v1205_v55 = vld [vmem:[%s1055_s18 + $0x148] sm:$0xff]  ;;  %v1208_v56 = vld [vmem:[%s1055_s18 + $0x1b0] sm:$0xff] }
  0x1e   : > { %247 = vadd.xlane.f32.xlu0 %v246_v17  ;;  %1715 = vst [vmem:[#allocation11_spill] sm:$0xff] %v1142_v31  ;;  %v300_v53 = vadd.f32 %v1193_v50, %v1190_v49  ;;  %v1211_v57 = vld [vmem:[%s1055_s18 + $0x1b8] sm:$0xff]  ;;  %v1214_v58 = vld [vmem:[%s1055_s18 + $0xd0] sm:$0xff]  ;;  %v303_v60 = vadd.f32 %v1205_v55, %v1202_v54  ;;  %v1226_v63 = vld [vmem:[%s1055_s18 + $0xe0] sm:$0xff] }
  0x1f   : > { %1716 = vst [vmem:[#allocation12_spill] sm:$0xff] %v1145_v32  ;;  %v1217_v59 = vld [vmem:[%s1055_s18 + $0xd8] sm:$0xff]  ;;  %v324_v61 = vadd.f32 %v1211_v57, %v1208_v56  ;;  %v1229_v3 = vld [vmem:[%s1055_s18 + $0xe8] sm:$0xff]  ;;  %v1232_v7 = vld [vmem:[%s1055_s18 + $0x150] sm:$0xff] }
  0x20   : > { %1717 = vst [vmem:[#allocation13_spill] sm:$0xff] %v1160_v38  ;;  %v282_v62 = vadd.f32 %v1217_v59, %v1214_v58  ;;  %v1235_v8 = vld [vmem:[%s1055_s18 + $0x158] sm:$0xff]  ;;  %v1238_v15 = vld [vmem:[%s1055_s18 + $0x60] sm:$0xff]  ;;  %v1241_v16 = vld [vmem:[%s1055_s18 + $0x68] sm:$0xff]  ;;  %v285_v17 = vadd.f32 %v1229_v3, %v1226_v63 }
  0x21   : > { %1718 = vst [vmem:[#allocation14_spill] sm:$0xff] %v1163_v39  ;;  %v374_v19 = vld [vmem:[%s1661_s1 + $0x18] sm:$0xff] }
  0x22   : > { %1719 = vst [vmem:[#allocation15_spill] sm:$0xff] %v1166_v40 }
  0x23   : > { %1720 = vst [vmem:[#allocation16_spill] sm:$0xff] %v1169_v41 }
  0x24   : > { %295 = vadd.xlane.f32.xlu1 %v294_v24  ;;  %1721 = vst [vmem:[#allocation17_spill] sm:$0xff] %v1178_v45  ;;  %v306_v24 = vadd.f32 %v1235_v8, %v1232_v7 }
  0x25   : > { %253 = vadd.xlane.f32.xlu2 %v252_v25  ;;  %1722 = vst [vmem:[#allocation18_spill] sm:$0xff] %v1181_v46  ;;  %v261_v25 = vadd.f32 %v1241_v16, %v1238_v15  ;;  %v1307_v46 = vld [vmem:[%s1055_s18 + $0x1e8] sm:$0xff] }
  0x26   : > { %292 = vadd.xlane.f32.xlu0 %v291_v26  ;;  %1723 = vst [vmem:[#allocation19_spill] sm:$0xff] %v1190_v49  ;;  %v1250_v26 = vld [vmem:[%s1055_s18 + $0x70] sm:$0xff] }
  0x27   : > { %1724 = vst [vmem:[#allocation20_spill] sm:$0xff] %v1193_v50 }
  0x28   : > { %1725 = vst [vmem:[#allocation21_spill] sm:$0xff] %v1202_v54 }
  0x29   : > { %1726 = vst [vmem:[#allocation22_spill] sm:$0xff] %v1205_v55 }
  0x2a   : > { %1727 = vst [vmem:[#allocation23_spill] sm:$0xff] %v1208_v56  ;;  %v1304_v56 = vld [vmem:[%s1055_s18 + $0x1e0] sm:$0xff] }
  0x2b   : > { %1728 = vst [vmem:[#allocation24_spill] sm:$0xff] %v1211_v57  ;;  %v1301_v57 = vld [vmem:[%s1055_s18 + $0x1f8] sm:$0xff] }
  0x2c   : > { %298 = vadd.xlane.f32.xlu1 %v297_v33  ;;  %1729 = vst [vmem:[#allocation25_spill] sm:$0xff] %v1226_v63  ;;  %v1253_v33 = vld [vmem:[%s1055_s18 + $0x78] sm:$0xff] }
  0x2d   : > { %316 = vadd.xlane.f32.xlu2 %v315_v34  ;;  %1730 = vst [vmem:[#allocation26_spill] sm:$0xff] %v1229_v3  ;;  %v1256_v34 = vld [vmem:[%s1055_s18 + $0xf0] sm:$0xff] }
  0x2e   : > { %277 = vadd.xlane.f32.xlu0 %v276_v35  ;;  %1731 = vst [vmem:[#allocation27_spill] sm:$0xff] %v1232_v7  ;;  %v1259_v35 = vld [vmem:[%s1055_s18 + $0xf8] sm:$0xff] }
  0x2f   : > { %1732 = vst [vmem:[#allocation28_spill] sm:$0xff] %v1235_v8 }
  0x30   : > { %1733 = vst [vmem:[#allocation29_spill] sm:$0xff] %v1256_v34 }
  0x31   : > { %1734 = vst [vmem:[#allocation30_spill] sm:$0xff] %v1259_v35 }
  0x32   : > { %1744 = vst [vmem:[#allocation40_spill] sm:$0xff] %v1301_v57 }
  0x33   : > { %1745 = vst [vmem:[#allocation41_spill] sm:$0xff] %v1304_v56 }
  0x34   : > { %256 = vadd.xlane.f32.xlu1 %v255_v42  ;;  %v1262_v42 = vld [vmem:[%s1055_s18 + $0x1c0] sm:$0xff]  ;;  %1746 = vst [vmem:[#allocation42_spill] sm:$0xff] %v1307_v46 }
  0x35   : > { %280 = vadd.xlane.f32.xlu2 %v279_v43  ;;  %1735 = vst [vmem:[#allocation31_spill] sm:$0xff] %v1262_v42  ;;  %v1265_v43 = vld [vmem:[%s1055_s18 + $0x1c8] sm:$0xff] }
  0x36   : > { %319 = vadd.xlane.f32.xlu0 %v318_v44  ;;  %1736 = vst [vmem:[#allocation32_spill] sm:$0xff] %v1265_v43  ;;  %v264_v44 = vadd.f32 %v1253_v33, %v1250_v26 }
  0x3c   : > { %322 = vadd.xlane.f32.xlu1 %v321_v51  ;;  %v288_v51 = vadd.f32 %v1259_v35, %v1256_v34 }
  0x3d   : > { %259 = vadd.xlane.f32.xlu2 %v258_v52  ;;  %v327_v52 = vadd.f32 %v1265_v43, %v1262_v42 }
  0x3e   : > { %301 = vadd.xlane.f32.xlu0 %v300_v53  ;;  %v1274_v53 = vld [vmem:[%s1055_s18 + $0x1d0] sm:$0xff] }
  0x3f   : > { %1737 = vst [vmem:[#allocation33_spill] sm:$0xff] %v1274_v53 }
  0x44   : > { %304 = vadd.xlane.f32.xlu1 %v303_v60  ;;  %v1277_v60 = vld [vmem:[%s1055_s18 + $0x1d8] sm:$0xff] }
  0x45   : > { %325 = vadd.xlane.f32.xlu2 %v324_v61  ;;  %1738 = vst [vmem:[#allocation34_spill] sm:$0xff] %v1277_v60  ;;  %v1280_v61 = vld [vmem:[%s1055_s18 + $0x160] sm:$0xff] }
  0x46   : > { %283 = vadd.xlane.f32.xlu0 %v282_v62  ;;  %1739 = vst [vmem:[#allocation35_spill] sm:$0xff] %v1280_v61  ;;  %v1283_v62 = vld [vmem:[%s1055_s18 + $0x168] sm:$0xff] }
  0x47   : > { %1740 = vst [vmem:[#allocation36_spill] sm:$0xff] %v1283_v62 }
  0x4c   : > { %286 = vadd.xlane.f32.xlu1 %v285_v17  ;;  %v1286_v17 = vld [vmem:[%s1055_s18 + $0x170] sm:$0xff] }
  0x4d   : > { %307 = vadd.xlane.f32.xlu2 %v306_v24  ;;  %1741 = vst [vmem:[#allocation37_spill] sm:$0xff] %v1286_v17  ;;  %v1289_v24 = vld [vmem:[%s1055_s18 + $0x178] sm:$0xff] }
  0x4e   : > { %262 = vadd.xlane.f32.xlu0 %v261_v25  ;;  %1742 = vst [vmem:[#allocation38_spill] sm:$0xff] %v1289_v24  ;;  %v330_v25 = vadd.f32 %v1277_v60, %v1274_v53  ;;  %v333_v53 = vadd.f32 %v1307_v46, %v1304_v56 }
  0x54   : > { %265 = vadd.xlane.f32.xlu1 %v264_v44  ;;  %v309_v44 = vadd.f32 %v1283_v62, %v1280_v61 }
  0x55   : > { %289 = vadd.xlane.f32.xlu2 %v288_v51  ;;  %v312_v51 = vadd.f32 %v1289_v24, %v1286_v17 }
  0x56   : > { %328 = vadd.xlane.f32.xlu0 %v327_v52  ;;  %v1298_v52 = vld [vmem:[%s1055_s18 + $0x1f0] sm:$0xff] }
  0x57   : > { %1743 = vst [vmem:[#allocation39_spill] sm:$0xff] %v1298_v52  ;;  %v336_v60 = vadd.f32 %v1301_v57, %v1298_v52 }
  0x5c   : > { %331 = vadd.xlane.f32.xlu1 %v330_v25  ;;  %v1680_v25 = vlaneseq }
  0x5d   : > { %313 = vadd.xlane.f32.xlu2 %v312_v51 }
  0x5e   : > { %310 = vadd.xlane.f32.xlu0 %v309_v44  ;;  %v1314_v41 = vand.u32 127, %v1680_v25 }
  0x60   : > { %v1317_v30 = vadd.s32 4294967280, %v1314_v41  ;;  %v1320_v62 = vadd.s32 4294967288, %v1314_v41  ;;  %v1373_v22 = vadd.s32 4294967272, %v1314_v41  ;;  %v1379_v63 = vadd.s32 4294967256, %v1314_v41 }
  0x64   : > { %337 = vadd.xlane.f32.xlu1 %v336_v60 }
  0x66   : > { %334 = vadd.xlane.f32.xlu0 %v333_v53 }
  0x87   : > { %v269_v45 = vpop.xlane.xlu1 %268 }
  0x88   : > { %v251_v44 = vpop.xlane.xlu2 %250  ;;  %v347_v40 = vmul.f32 0.00390625, %v269_v45 }
  0x89   : > { %v245_v51 = vpop.xlane.xlu0 %244  ;;  %v341_v29 = vmul.f32 0.00390625, %v251_v44 }
  0x8a   : > { %v339_v57 = vmul.f32 0.00390625, %v245_v51  ;;  %v442_v61 = vperm.slane %v347_v40, %v1314_v41 }
  0x8b   : > { %v419_v25 = vperm.slane %v341_v29, %v1317_v30 }
  0x8c   : > { %v413_v8 = vperm.slane %v339_v57, %v1314_v41 }
  0x8f   : > { %v272_v52 = vpop.xlane.xlu1 %271 }
  0x90   : > { %v348_v46 = vmul.f32 0.00390625, %v272_v52  ;;  %v275_v60 = vpop.xlane.xlu2 %274 }
  0x91   : > { %v248_v53 = vpop.xlane.xlu0 %247  ;;  %v349_v18 = vmul.f32 0.00390625, %v275_v60 }
  0x92   : > { %v340_v56 = vmul.f32 0.00390625, %v248_v53  ;;  %v443_v45 = vperm.slane %v348_v46, %v1320_v62 }
  0x93   : > { %v445_v60 = vperm.slane %v349_v18, %v1317_v30  ;;  %v1391_v18 = vadd.s32 4294967240, %v1314_v41 }
  0x94   : > { %v415_v44 = vperm.slane %v340_v56, %v1320_v62  ;;  %v444_v7 = vsel %vm416_vm0, %v443_v45, %v442_v61  ;;  %v377_v45 = vld [vmem:[%s1661_s1 + $0x30] sm:$0xff] }
  0x96   : > { %v417_v51 = vsel %vm416_vm0, %v415_v44, %v413_v8  ;;  %v376_v44 = vld [vmem:[%s1661_s1 + $0x28] sm:$0xff] }
  0x97   : > { %v1330_v52 = vsel %vm420_vm1, %v419_v25, %v417_v51  ;;  %v296_v43 = vpop.xlane.xlu1 %295  ;;  %v378_v25 = vld [vmem:[%s1661_s1 + $0x38] sm:$0xff]  ;;  %v375_v51 = vld [vmem:[%s1661_s1 + $0x20] sm:$0xff] }
  0x98   : > { %v254_v53 = vpop.xlane.xlu2 %253  ;;  %504 = vmatpush.msra.mxu0 %v378_v25 }
  0x99   : > { %v1332_v42 = vpop.xlane.xlu0 %292 }
  0x9a   : > { %505 = vmatpush.msra.mxu0 %v377_v45  ;;  %v373_v45 = vld [vmem:[%s1661_s1 + $0x10] sm:$0xff] }
  0x9c   : > { %506 = vmatpush.msra.mxu0 %v376_v44  ;;  %v372_v44 = vld [vmem:[%s1661_s1 + $0x8] sm:$0xff] }
  0x9e   : > { %507 = vmatpush.msra.mxu0 %v375_v51  ;;  %v371_v51 = vld [vmem:[%s1661_s1] sm:$0xff] }
  0x9f   : > { %v1334_v40 = vpop.xlane.xlu1 %298 }
  0xa0   : > { %v1336_v29 = vpop.xlane.xlu2 %316  ;;  %508 = vmatpush.msra.mxu0 %v374_v19  ;;  %v342_v19 = vmul.f32 0.00390625, %v254_v53 }
  0xa1   : > { %v278_v46 = vpop.xlane.xlu0 %277 }
  0xa2   : > { %509 = vmatpush.msra.mxu0 %v373_v45  ;;  %v350_v35 = vmul.f32 0.00390625, %v278_v46  ;;  %v1376_v45 = vadd.s32 4294967264, %v1314_v41  ;;  %v423_v53 = vperm.slane %v342_v19, %v1373_v22 }
  0xa4   : > { %510 = vmatpush.msra.mxu0 %v372_v44  ;;  %v447_v46 = vperm.slane %v350_v35, %v1373_v22  ;;  %v425_v35 = vsel %vm424_vm2, %v423_v53, %v1330_v52  ;;  %v357_v53 = vmul.f32 0.00390625, %v1334_v40 }
  0xa6   : > { %511 = vmatpush.msra.mxu0 %v371_v51  ;;  %v1383_v51 = vadd.s32 4294967248, %v1314_v41  ;;  %v460_v40 = vperm.slane %v357_v53, %v1317_v30 }
  0xa7   : > { %v257_v57 = vpop.xlane.xlu1 %256 }
  0xa8   : > { %v281_v55 = vpop.xlane.xlu2 %280  ;;  %v343_v34 = vmul.f32 0.00390625, %v257_v57 }
  0xa9   : > { %v1338_v54 = vpop.xlane.xlu0 %319  ;;  %v351_v3 = vmul.f32 0.00390625, %v281_v55 }
  0xaa   : > { %v427_v55 = vperm.slane %v343_v34, %v1376_v45 }
  0xab   : > { %v449_v57 = vperm.slane %v351_v3, %v1376_v45 }
  0xac   : > { %v429_v12 = vsel %vm428_vm3, %v427_v55, %v425_v35  ;;  %v364_v35 = vmul.f32 0.00390625, %v1338_v54 }
  0xaf   : > { %v1340_v56 = vpop.xlane.xlu1 %322 }
  0xb0   : > { %v260_v61 = vpop.xlane.xlu2 %259 }
  0xb1   : > { %v1342_v8 = vpop.xlane.xlu0 %301  ;;  %v344_v39 = vmul.f32 0.00390625, %v260_v61 }
  0xb3   : > { %v431_v61 = vperm.slane %v344_v39, %v1379_v63 }
  0xb7   : > { %v1356_v50 = vpop.xlane.xlu1 %304 }
  0xb8   : > { %v1358_v49 = vpop.xlane.xlu2 %325 }
  0xb9   : > { %v284_v25 = vpop.xlane.xlu0 %283 }
  0xba   : > { %v352_v44 = vmul.f32 0.00390625, %v284_v25  ;;  %v446_v25 = vsel %vm420_vm1, %v445_v60, %v444_v7  ;;  %v433_v60 = vsel %vm432_vm4, %v431_v61, %v429_v12 }
  0xbb   : > { %v448_v27 = vsel %vm424_vm2, %v447_v46, %v446_v25  ;;  %v363_v25 = vmul.f32 0.00390625, %v1336_v29 }
  0xbc   : > { %v451_v19 = vperm.slane %v352_v44, %v1379_v63 }
  0xbf   : > { %v287_v23 = vpop.xlane.xlu1 %286 }
  0xc0   : > { %v308_v24 = vpop.xlane.xlu2 %307  ;;  %v353_v32 = vmul.f32 0.00390625, %v287_v23 }
  0xc1   : > { %v263_v17 = vpop.xlane.xlu0 %262 }
  0xc2   : > { %v345_v38 = vmul.f32 0.00390625, %v263_v17  ;;  %v356_v17 = vmul.f32 0.00390625, %v296_v43  ;;  %v453_v3 = vperm.slane %v353_v32, %v1383_v51  ;;  %v355_v43 = vmul.f32 0.00390625, %v1332_v42 }
  0xc3   : > { %v358_v42 = vmul.f32 0.00390625, %v1342_v8  ;;  %v365_v8 = vmul.f32 0.00390625, %v1340_v56 }
  0xc4   : > { %v435_v23 = vperm.slane %v345_v38, %v1383_v51  ;;  %v450_v38 = vsel %vm428_vm3, %v449_v57, %v448_v27  ;;  %v458_v12 = vperm.slane %v356_v17, %v1320_v62  ;;  %v457_v55 = vperm.slane %v355_v43, %v1314_v41 }
  0xc5   : > { %v452_v44 = vsel %vm432_vm4, %v451_v19, %v450_v38  ;;  %v359_v57 = vmul.f32 0.00390625, %v1356_v50  ;;  %v360_v19 = vmul.f32 0.00390625, %v308_v24  ;;  %v366_v38 = vmul.f32 0.00390625, %v1358_v49 }
  0xc6   : > { %v454_v46 = vsel %vm436_vm5, %v453_v3, %v452_v44  ;;  %v459_v43 = vsel %vm416_vm0, %v458_v12, %v457_v55  ;;  %v472_v24 = vperm.slane %v363_v25, %v1314_v41  ;;  %v473_v44 = vperm.slane %v364_v35, %v1320_v62 }
  0xc7   : > { %v266_v31 = vpop.xlane.xlu1 %265  ;;  %v464_v50 = vperm.slane %v359_v57, %v1376_v45  ;;  %v466_v29 = vperm.slane %v360_v19, %v1379_v63  ;;  %v461_v54 = vsel %vm420_vm1, %v460_v40, %v459_v43  ;;  %v477_v49 = vperm.slane %v366_v38, %v1373_v22 }
  0xc8   : > { %v346_v34 = vmul.f32 0.00390625, %v266_v31  ;;  %v290_v28 = vpop.xlane.xlu2 %289  ;;  %v437_v31 = vsel %vm436_vm5, %v435_v23, %v433_v60  ;;  %v474_v62 = vsel %vm416_vm0, %v473_v44, %v472_v24 }
  0xc9   : > { %v329_v39 = vpop.xlane.xlu0 %328  ;;  %v354_v7 = vmul.f32 0.00390625, %v290_v28 }
  0xca   : > { %v439_v52 = vperm.slane %v346_v34, %v1391_v18  ;;  %v367_v60 = vmul.f32 0.00390625, %v329_v39 }
  0xcb   : > { %v455_v32 = vperm.slane %v354_v7, %v1391_v18  ;;  %v462_v7 = vperm.slane %v358_v42, %v1373_v22 }
  0xcc   : > { %v441_v28 = vsel %vm440_vm6, %v439_v52, %v437_v31  ;;  %v479_v39 = vperm.slane %v367_v60, %v1376_v45 }
  0xcd   : > { %v456_v27 = vsel %vm440_vm6, %v455_v32, %v454_v46  ;;  %v475_v32 = vperm.slane %v365_v8, %v1317_v30  ;;  %v463_v53 = vsel %vm424_vm2, %v462_v7, %v461_v54 }
  0xce   : > { %v488_v61 = vsel %vm487_vm7, %v456_v27, %v441_v28  ;;  %v465_v46 = vsel %vm428_vm3, %v464_v50, %v463_v53 }
  0xcf   : > { %v332_v23 = vpop.xlane.xlu1 %331  ;;  %v467_v41 = vsel %vm432_vm4, %v466_v29, %v465_v46  ;;  %v476_v57 = vsel %vm420_vm1, %v475_v32, %v474_v62 }
  0xd0   : > { %v314_v34 = vpop.xlane.xlu2 %313  ;;  %v368_v56 = vmul.f32 0.00390625, %v332_v23  ;;  %v478_v22 = vsel %vm424_vm2, %v477_v49, %v476_v57 }
  0xd1   : > { %v311_v3 = vpop.xlane.xlu0 %310  ;;  %v362_v52 = vmul.f32 0.00390625, %v314_v34  ;;  %v480_v45 = vsel %vm428_vm3, %v479_v39, %v478_v22 }
  0xd2   : > { %v361_v17 = vmul.f32 0.00390625, %v311_v3  ;;  %v481_v27 = vperm.slane %v368_v56, %v1379_v63 }
  0xd3   : > { %v470_v28 = vperm.slane %v362_v52, %v1391_v18 }
  0xd4   : > { %v468_v31 = vperm.slane %v361_v17, %v1383_v51  ;;  %v482_v63 = vsel %vm432_vm4, %v481_v27, %v480_v45  ;;  %v1747_v17 = vlaneseq }
  0xd6   : > { %v469_v12 = vsel %vm436_vm5, %v468_v31, %v467_v41  ;;  %v1452_v43 = vshrl.u32 %v1747_v17, 7 }
  0xd7   : > { %v338_v42 = vpop.xlane.xlu1 %337  ;;  %v471_v40 = vsel %vm440_vm6, %v470_v28, %v469_v12 }
  0xd8   : > { %v370_v55 = vmul.f32 0.00390625, %v338_v42  ;;  %v490_v34 = vsel %vm489_vm8, %v471_v40, %v488_v61  ;;  %974 = vset.pattern.permute.xlu2 %v1452_v43  ;;  %v1456_v50 = vadd.s32 16, %v1452_v43  ;;  %v1459_v61 = vadd.s32 8, %v1452_v43 }
  0xd9   : > { %v335_v30 = vpop.xlane.xlu0 %334  ;;  %v1464_v28 = vadd.s32 40, %v1452_v43  ;;  %v1467_v42 = vadd.s32 24, %v1452_v43  ;;  %v1473_v27 = vadd.s32 56, %v1452_v43  ;;  %v592_v12 = vadd.s32 32, %v1452_v43 }
  0xda   : > { %v369_v25 = vmul.f32 0.00390625, %v335_v30  ;;  %v485_v19 = vperm.slane %v370_v55, %v1391_v18  ;;  %v517_v18 = vld [vmem:[%s1662_s2] sm:$0xf]  ;;  %976 = vset.pattern.permute.xlu1 %v1456_v50  ;;  %975 = vset.pattern.permute.xlu0 %v1459_v61  ;;  %v1479_v30 = vadd.s32 48, %v1452_v43 }
  0xdb   : > { %959 = vmatpush.msk.msra.mxu1 %vm522_vm11, %v517_v18 }
  0xdc   : > { %v483_v23 = vperm.slane %v369_v25, %v1383_v51 }
  0xde   : > { %v484_v35 = vsel %vm436_vm5, %v483_v23, %v482_v63 }
  0xdf   : > { %v486_v3 = vsel %vm440_vm6, %v485_v19, %v484_v35 }
  0xe0   : > { %v492_v8 = vsel %vm491_vm9, %v486_v3, %v490_v34 }
  0xe1   : > { %958 = vmatmul.msk.f32.vlgmr.msra.gmra.mxu0 %vm493_vm10, %v492_v8 }
 0x15e   : > { %v513_v51 = vpop.f32.mrf.mxu0 }
 0x15f   : > { %v516_v7 = vmax.f32 %v513_v51, 0.0 }
 0x161   : > { %960 = vmatmul.msk.f32.vlgmr.msra.gmra.mxu1 %vm518_vm12, %v516_v7 }
 0x1de   : > { %v543_v38 = vpop.f32.mrf.mxu1 }
 0x1df   : > { %v961_v24 = vmul.f32 -1.442695, %v543_v38 }
 0x1e1   : > { %1007 = vpow2.f32 %v961_v24  ;;  %v1749_v24 = vld [vmem:[#allocation7_spill] sm:$0xff] }
 0x1e7   : > { %v1008_v29 = vpop.eup %1007 }
 0x1e8   : > { %v549_v60 = vadd.f32 1.0, %v1008_v29 }
 0x1ea   : > { %1009 = vrcp.f32 %v549_v60  ;;  %v561_v56 = vand.u32 2147483648, %v549_v60  ;;  %v559_v32 = vand.u32 2147483647, %v549_v60  ;;  %vm555_vm14 = vweird.f32 %v549_v60 }
 0x1ec   : > { %v562_v46 = vor.u32 1.1754944e-38, %v561_v56  ;;  %vm560_vm0 = vcmp.eq.f32.partialorder %v559_v32, 8.507059e+37 }
 0x1f0   : > { %v1010_v52 = vpop.eup %1009 }
 0x1f1   : > { %v551_v54 = vmul.f32 %v1010_v52, %v549_v60  ;;  %vm556_vm13 = vweird.f32 %v1010_v52  ;;  %v1750_v60 = vld [vmem:[#allocation8_spill] sm:$0xff] }
 0x1f2   : > { %vm557_vm15 = vmor %vm555_vm14, %vm556_vm13 }
 0x1f3   : > { %v552_v44 = vsub.f32 1.0, %v551_v54  ;;  %v1752_v54 = vld [vmem:[#allocation12_spill] sm:$0xff] }
 0x1f5   : > { %v553_v31 = vmul.f32 %v1010_v52, %v552_v44 }
 0x1f7   : > { %v554_v53 = vadd.f32 %v1010_v52, %v553_v31  ;;  %v1753_v31 = vld [vmem:[#allocation13_spill] sm:$0xff] }
 0x1f9   : > { %v558_v49 = vsel %vm557_vm15, %v1010_v52, %v554_v53  ;;  %v1751_v52 = vld [vmem:[#allocation11_spill] sm:$0xff]  ;;  %v1754_v53 = vld [vmem:[#allocation14_spill] sm:$0xff] }
 0x1fa   : > { %v563_v41 = vsel %vm560_vm0, %v562_v46, %v558_v49  ;;  %v1755_v49 = vld [vmem:[#allocation25_spill] sm:$0xff] }
 0x1fb   : > { %v565_v39 = vperm.slane %v563_v41, 0  ;;  %v614_v62 = vperm.slane %v563_v41, 1  ;;  %v1484_v55 = vperm.slane %v563_v41, 2  ;;  %v1492_v57 = vperm.slane %v563_v41, 3 }
 0x1fd   : > { %582 = vperm.xlu1 %976, %v565_v39   ;;  %576 = vperm.xlu0 %975, %v565_v39  }
 0x1fe   : > { %570 = vperm.xlu2 %974, %v565_v39  }
 0x205   : > { %979 = vset.pattern.permute.xlu1 %v1464_v28  ;;  %982 = vset.pattern.permute.xlu0 %v1452_v43 }
 0x206   : > { %977 = vset.pattern.permute.xlu2 %v1467_v42 }
 0x20d   : > { %600 = vperm.xlu1 %979, %v565_v39   ;;  %619 = vperm.xlu0 %982, %v614_v62  }
 0x20e   : > { %588 = vperm.xlu2 %977, %v565_v39  }
 0x215   : > { %981 = vset.pattern.permute.xlu1 %v1473_v27  ;;  %987 = vset.pattern.permute.xlu0 %v1464_v28 }
 0x216   : > { %978 = vset.pattern.permute.xlu2 %v592_v12 }
 0x21d   : > { %612 = vperm.xlu1 %981, %v565_v39   ;;  %649 = vperm.xlu0 %987, %v614_v62  }
 0x21e   : > { %594 = vperm.xlu2 %978, %v565_v39  }
 0x225   : > { %984 = vset.pattern.permute.xlu1 %v1456_v50  ;;  %992 = vset.pattern.permute.xlu0 %v1456_v50 }
 0x226   : > { %980 = vset.pattern.permute.xlu2 %v1479_v30 }
 0x22d   : > { %631 = vperm.xlu1 %984, %v614_v62   ;;  %680 = vperm.xlu0 %992, %v1484_v55  }
 0x22e   : > { %606 = vperm.xlu2 %980, %v565_v39   ;;  %v1756_v39 = vld [vmem:[#allocation26_spill] sm:$0xff] }
 0x235   : > { %986 = vset.pattern.permute.xlu1 %v592_v12  ;;  %997 = vset.pattern.permute.xlu0 %v1473_v27 }
 0x236   : > { %983 = vset.pattern.permute.xlu2 %v1459_v61 }
 0x23d   : > { %643 = vperm.xlu1 %986, %v614_v62   ;;  %710 = vperm.xlu0 %997, %v1484_v55  }
 0x23e   : > { %625 = vperm.xlu2 %983, %v614_v62  }
 0x245   : > { %989 = vset.pattern.permute.xlu1 %v1473_v27  ;;  %1002 = vset.pattern.permute.xlu0 %v592_v12 }
 0x246   : > { %985 = vset.pattern.permute.xlu2 %v1467_v42 }
 0x24d   : > { %661 = vperm.xlu1 %989, %v614_v62   ;;  %741 = vperm.xlu0 %1002, %v1492_v57  }
 0x24e   : > { %637 = vperm.xlu2 %985, %v614_v62  }
 0x255   : > { %991 = vset.pattern.permute.xlu1 %v1459_v61  ;;  %1006 = vset.pattern.permute.xlu0 %v1473_v27 }
 0x256   : > { %988 = vset.pattern.permute.xlu2 %v1479_v30 }
 0x258   : > { %v571_v25 = vpop.permute.xlu2 %570 }
 0x259   : > { %v761_v22 = vmul.f32 %v571_v25, %v1072_v5  ;;  %v762_v19 = vmul.f32 %v571_v25, %v1075_v6  ;;  %v1758_v25 = vld [vmem:[#allocation30_spill] sm:$0xff] }
 0x25b   : > { %825 = vst [vmem:[%s1503_s13] sm:$0xff] %v761_v22 }
 0x25c   : > { %826 = vst [vmem:[%s1503_s13 + $0x8] sm:$0xff] %v762_v19  ;;  %v1759_v19 = vld [vmem:[#allocation37_spill] sm:$0xff] }
 0x25d   : > { %674 = vperm.xlu1 %991, %v1484_v55  }
 0x25e   : > { %655 = vperm.xlu2 %988, %v614_v62  }
 0x265   : > { %994 = vset.pattern.permute.xlu1 %v592_v12 }
 0x266   : > { %990 = vset.pattern.permute.xlu2 %v1452_v43 }
 0x268   : > { %v589_v45 = vpop.permute.xlu2 %588 }
 0x269   : > { %v767_v23 = vmul.f32 %v589_v45, %v1112_v20  ;;  %v768_v40 = vmul.f32 %v589_v45, %v1115_v21  ;;  %v1760_v45 = vld [vmem:[#allocation38_spill] sm:$0xff] }
 0x26b   : > { %831 = vst [vmem:[%s1503_s13 + $0x30] sm:$0xff] %v767_v23 }
 0x26c   : > { %832 = vst [vmem:[%s1503_s13 + $0x38] sm:$0xff] %v768_v40 }
 0x26d   : > { %692 = vperm.xlu1 %994, %v1484_v55  }
 0x26e   : > { %668 = vperm.xlu2 %990, %v1484_v55  }
 0x26f   : > { %v583_v5 = vpop.permute.xlu1 %582  ;;  %v577_v6 = vpop.permute.xlu0 %576 }
 0x270   : > { %v765_v63 = vmul.f32 %v583_v5, %v1064_v2  ;;  %v766_v35 = vmul.f32 %v583_v5, %v1069_v4  ;;  %v763_v3 = vmul.f32 %v577_v6, %v1094_v13  ;;  %v764_v20 = vmul.f32 %v577_v6, %v1097_v14  ;;  %v1761_v5 = vld [vmem:[#allocation5_spill] sm:$0xff] }
 0x272   : > { %829 = vst [vmem:[%s1503_s13 + $0x20] sm:$0xff] %v765_v63  ;;  %v1762_v63 = vld [vmem:[#allocation6_spill] sm:$0xff] }
 0x273   : > { %830 = vst [vmem:[%s1503_s13 + $0x28] sm:$0xff] %v766_v35 }
 0x274   : > { %827 = vst [vmem:[%s1503_s13 + $0x10] sm:$0xff] %v763_v3 }
 0x275   : > { %828 = vst [vmem:[%s1503_s13 + $0x18] sm:$0xff] %v764_v20  ;;  %996 = vset.pattern.permute.xlu1 %v1479_v30  ;;  %v1763_v20 = vld [vmem:[#allocation3_spill] sm:$0xff] }
 0x276   : > { %993 = vset.pattern.permute.xlu2 %v1467_v42 }
 0x278   : > { %v595_v21 = vpop.permute.xlu2 %594 }
 0x279   : > { %v769_v2 = vmul.f32 %v595_v21, %v1154_v36  ;;  %v770_v4 = vmul.f32 %v595_v21, %v1157_v37 }
 0x27b   : > { %833 = vst [vmem:[%s1503_s13 + $0x40] sm:$0xff] %v769_v2  ;;  %v1764_v2 = vld [vmem:[#allocation4_spill] sm:$0xff] }
 0x27c   : > { %834 = vst [vmem:[%s1503_s13 + $0x48] sm:$0xff] %v770_v4 }
 0x27d   : > { %704 = vperm.xlu1 %996, %v1484_v55  }
 0x27e   : > { %686 = vperm.xlu2 %993, %v1484_v55  }
 0x27f   : > { %v601_v13 = vpop.permute.xlu1 %600  ;;  %v620_v14 = vpop.permute.xlu0 %619 }
 0x280   : > { %v771_v34 = vmul.f32 %v601_v13, %v1184_v47  ;;  %v772_v8 = vmul.f32 %v601_v13, %v1187_v48  ;;  %v777_v18 = vmul.f32 %v620_v14, %v1058_v0  ;;  %v778_v36 = vmul.f32 %v620_v14, %v1061_v1  ;;  %v1765_v13 = vld [vmem:[#allocation19_spill] sm:$0xff] }
 0x282   : > { %835 = vst [vmem:[%s1503_s13 + $0x50] sm:$0xff] %v771_v34  ;;  %v1766_v34 = vld [vmem:[#allocation20_spill] sm:$0xff] }
 0x283   : > { %836 = vst [vmem:[%s1503_s13 + $0x58] sm:$0xff] %v772_v8 }
 0x284   : > { %841 = vst [vmem:[%s1503_s13 + $0x80] sm:$0xff] %v777_v18 }
 0x285   : > { %842 = vst [vmem:[%s1503_s13 + $0x88] sm:$0xff] %v778_v36  ;;  %999 = vset.pattern.permute.xlu1 %v1459_v61  ;;  %v1767_v36 = vld [vmem:[#allocation21_spill] sm:$0xff] }
 0x286   : > { %995 = vset.pattern.permute.xlu2 %v1464_v28 }
 0x288   : > { %v607_v37 = vpop.permute.xlu2 %606 }
 0x289   : > { %v773_v47 = vmul.f32 %v607_v37, %v1238_v15  ;;  %v774_v48 = vmul.f32 %v607_v37, %v1241_v16 }
 0x28b   : > { %837 = vst [vmem:[%s1503_s13 + $0x60] sm:$0xff] %v773_v47  ;;  %v1768_v47 = vld [vmem:[#allocation22_spill] sm:$0xff] }
 0x28c   : > { %838 = vst [vmem:[%s1503_s13 + $0x68] sm:$0xff] %v774_v48 }
 0x28d   : > { %723 = vperm.xlu1 %999, %v1492_v57  }
 0x28e   : > { %698 = vperm.xlu2 %995, %v1484_v55  }
 0x28f   : > { %v613_v0 = vpop.permute.xlu1 %612  ;;  %v650_v1 = vpop.permute.xlu0 %649 }
 0x290   : > { %v775_v51 = vmul.f32 %v613_v0, %v1250_v26  ;;  %v776_v7 = vmul.f32 %v613_v0, %v1253_v33  ;;  %v787_v17 = vmul.f32 %v650_v1, %v1214_v58  ;;  %v788_v15 = vmul.f32 %v650_v1, %v1217_v59  ;;  %v1769_v0 = vld [vmem:[#allocation31_spill] sm:$0xff] }
 0x292   : > { %839 = vst [vmem:[%s1503_s13 + $0x70] sm:$0xff] %v775_v51  ;;  %v1770_v51 = vld [vmem:[#allocation32_spill] sm:$0xff] }
 0x293   : > { %840 = vst [vmem:[%s1503_s13 + $0x78] sm:$0xff] %v776_v7 }
 0x294   : > { %851 = vst [vmem:[%s1503_s13 + $0xd0] sm:$0xff] %v787_v17 }
 0x295   : > { %852 = vst [vmem:[%s1503_s13 + $0xd8] sm:$0xff] %v788_v15  ;;  %1001 = vset.pattern.permute.xlu1 %v1467_v42  ;;  %v1771_v15 = vld [vmem:[#allocation27_spill] sm:$0xff] }
 0x296   : > { %998 = vset.pattern.permute.xlu2 %v1452_v43  ;;  %v1748_v43 = vld [vmem:[#allocation2_spill] sm:$0xff] }
 0x298   : > { %v626_v16 = vpop.permute.xlu2 %625 }
 0x299   : > { %v779_v26 = vmul.f32 %v626_v16, %v1082_v9  ;;  %v780_v33 = vmul.f32 %v626_v16, %v1085_v10 }
 0x29b   : > { %843 = vst [vmem:[%s1503_s13 + $0x90] sm:$0xff] %v779_v26  ;;  %v1772_v26 = vld [vmem:[#allocation28_spill] sm:$0xff] }
 0x29c   : > { %844 = vst [vmem:[%s1503_s13 + $0x98] sm:$0xff] %v780_v33 }
 0x29d   : > { %735 = vperm.xlu1 %1001, %v1492_v57  }
 0x29e   : > { %717 = vperm.xlu2 %998, %v1492_v57  }
 0x29f   : > { %v632_v58 = vpop.permute.xlu1 %631  ;;  %v681_v59 = vpop.permute.xlu0 %680 }
 0x2a0   : > { %v781_v61 = vmul.f32 %v632_v58, %v1088_v11  ;;  %v782_v38 = vmul.f32 %v632_v58, %v1748_v43  ;;  %v797_v29 = vmul.f32 %v681_v59, %v1749_v24  ;;  %v798_v9 = vmul.f32 %v681_v59, %v1750_v60  ;;  %v1773_v59 = vld [vmem:[#allocation35_spill] sm:$0xff]  ;;  %v1774_v43 = vld [vmem:[#allocation36_spill] sm:$0xff] }
 0x2a2   : > { %845 = vst [vmem:[%s1503_s13 + $0xa0] sm:$0xff] %v781_v61 }
 0x2a3   : > { %846 = vst [vmem:[%s1503_s13 + $0xa8] sm:$0xff] %v782_v38 }
 0x2a4   : > { %861 = vst [vmem:[%s1503_s13 + $0x120] sm:$0xff] %v797_v29  ;;  %v1775_v29 = vld [vmem:[#allocation9_spill] sm:$0xff] }
 0x2a5   : > { %862 = vst [vmem:[%s1503_s13 + $0x128] sm:$0xff] %v798_v9  ;;  %1004 = vset.pattern.permute.xlu1 %v1479_v30  ;;  %v1757_v30 = vld [vmem:[#allocation29_spill] sm:$0xff]  ;;  %v1776_v9 = vld [vmem:[#allocation10_spill] sm:$0xff] }
 0x2a6   : > { %1000 = vset.pattern.permute.xlu2 %v1456_v50 }
 0x2a8   : > { %v638_v10 = vpop.permute.xlu2 %637 }
 0x2a9   : > { %v783_v11 = vmul.f32 %v638_v10, %v1751_v52  ;;  %v784_v44 = vmul.f32 %v638_v10, %v1752_v54 }
 0x2ab   : > { %847 = vst [vmem:[%s1503_s13 + $0xb0] sm:$0xff] %v783_v11  ;;  %v1777_v11 = vld [vmem:[#allocation15_spill] sm:$0xff] }
 0x2ac   : > { %848 = vst [vmem:[%s1503_s13 + $0xb8] sm:$0xff] %v784_v44  ;;  %v1778_v44 = vld [vmem:[#allocation16_spill] sm:$0xff] }
 0x2ad   : > { %753 = vperm.xlu1 %1004, %v1492_v57  }
 0x2ae   : > { %729 = vperm.xlu2 %1000, %v1492_v57  }
 0x2af   : > { %v644_v56 = vpop.permute.xlu1 %643  ;;  %v711_v62 = vpop.permute.xlu0 %710 }
 0x2b0   : > { %v785_v32 = vmul.f32 %v644_v56, %v1753_v31  ;;  %v786_v46 = vmul.f32 %v644_v56, %v1754_v53  ;;  %v808_v23 = vmul.f32 %v711_v62, %v1760_v45 }
 0x2b2   : > { %849 = vst [vmem:[%s1503_s13 + $0xc0] sm:$0xff] %v785_v32  ;;  %v1779_v32 = vld [vmem:[#allocation17_spill] sm:$0xff] }
 0x2b3   : > { %850 = vst [vmem:[%s1503_s13 + $0xc8] sm:$0xff] %v786_v46  ;;  %v1780_v46 = vld [vmem:[#allocation18_spill] sm:$0xff] }
 0x2b4   : > { %872 = vst [vmem:[%s1503_s13 + $0x178] sm:$0xff] %v808_v23  ;;  %v1786_v23 = vld [vmem:[#allocation42_spill] sm:$0xff] }
 0x2b6   : > { %1003 = vset.pattern.permute.xlu2 %v1464_v28  ;;  %v807_v28 = vmul.f32 %v711_v62, %v1759_v19 }
 0x2b8   : > { %v656_v50 = vpop.permute.xlu2 %655  ;;  %871 = vst [vmem:[%s1503_s13 + $0x170] sm:$0xff] %v807_v28  ;;  %v1785_v28 = vld [vmem:[#allocation41_spill] sm:$0xff] }
 0x2b9   : > { %v789_v41 = vmul.f32 %v656_v50, %v1755_v49  ;;  %v790_v42 = vmul.f32 %v656_v50, %v1756_v39 }
 0x2bb   : > { %853 = vst [vmem:[%s1503_s13 + $0xe0] sm:$0xff] %v789_v41  ;;  %v1781_v41 = vld [vmem:[#allocation23_spill] sm:$0xff] }
 0x2bc   : > { %854 = vst [vmem:[%s1503_s13 + $0xe8] sm:$0xff] %v790_v42  ;;  %v1782_v42 = vld [vmem:[#allocation24_spill] sm:$0xff] }
 0x2be   : > { %747 = vperm.xlu2 %1003, %v1492_v57  }
 0x2bf   : > { %v662_v12 = vpop.permute.xlu1 %661 }
 0x2c0   : > { %v791_v55 = vmul.f32 %v662_v12, %v1757_v30  ;;  %v792_v22 = vmul.f32 %v662_v12, %v1758_v25  ;;  %v1783_v30 = vld [vmem:[#allocation33_spill] sm:$0xff]  ;;  %v1784_v25 = vld [vmem:[#allocation34_spill] sm:$0xff] }
 0x2c2   : > { %855 = vst [vmem:[%s1503_s13 + $0xf0] sm:$0xff] %v791_v55 }
 0x2c3   : > { %856 = vst [vmem:[%s1503_s13 + $0xf8] sm:$0xff] %v792_v22 }
 0x2c6   : > { %1005 = vset.pattern.permute.xlu2 %v1473_v27 }
 0x2c8   : > { %v669_v40 = vpop.permute.xlu2 %668 }
 0x2c9   : > { %v793_v6 = vmul.f32 %v669_v40, %v1761_v5  ;;  %v794_v35 = vmul.f32 %v669_v40, %v1762_v63 }
 0x2cb   : > { %857 = vst [vmem:[%s1503_s13 + $0x100] sm:$0xff] %v793_v6  ;;  %v1787_v6 = vld [vmem:[#allocation39_spill] sm:$0xff] }
 0x2cc   : > { %858 = vst [vmem:[%s1503_s13 + $0x108] sm:$0xff] %v794_v35  ;;  %v1788_v35 = vld [vmem:[#allocation40_spill] sm:$0xff] }
 0x2ce   : > { %759 = vperm.xlu2 %1005, %v1492_v57   ;;  %v742_v57 = vpop.permute.xlu0 %741 }
 0x2cf   : > { %v675_v3 = vpop.permute.xlu1 %674  ;;  %v817_v1 = vmul.f32 %v742_v57, %v1769_v0  ;;  %v818_v7 = vmul.f32 %v742_v57, %v1770_v51 }
 0x2d0   : > { %v795_v21 = vmul.f32 %v675_v3, %v1763_v20  ;;  %v796_v4 = vmul.f32 %v675_v3, %v1764_v2 }
 0x2d1   : > { %881 = vst [vmem:[%s1503_s13 + $0x1c0] sm:$0xff] %v817_v1 }
 0x2d2   : > { %859 = vst [vmem:[%s1503_s13 + $0x110] sm:$0xff] %v795_v21 }
 0x2d3   : > { %860 = vst [vmem:[%s1503_s13 + $0x118] sm:$0xff] %v796_v4 }
 0x2d4   : > { %882 = vst [vmem:[%s1503_s13 + $0x1c8] sm:$0xff] %v818_v7 }
 0x2d8   : > { %v687_v27 = vpop.permute.xlu2 %686 }
 0x2d9   : > { %v799_v14 = vmul.f32 %v687_v27, %v1765_v13  ;;  %v800_v8 = vmul.f32 %v687_v27, %v1766_v34 }
 0x2db   : > { %863 = vst [vmem:[%s1503_s13 + $0x130] sm:$0xff] %v799_v14 }
 0x2dc   : > { %864 = vst [vmem:[%s1503_s13 + $0x138] sm:$0xff] %v800_v8 }
 0x2df   : > { %v693_v18 = vpop.permute.xlu1 %692 }
 0x2e0   : > { %v801_v37 = vmul.f32 %v693_v18, %v1767_v36  ;;  %v802_v48 = vmul.f32 %v693_v18, %v1768_v47 }
 0x2e2   : > { %865 = vst [vmem:[%s1503_s13 + $0x140] sm:$0xff] %v801_v37 }
 0x2e3   : > { %866 = vst [vmem:[%s1503_s13 + $0x148] sm:$0xff] %v802_v48 }
 0x2e8   : > { %v699_v17 = vpop.permute.xlu2 %698 }
 0x2e9   : > { %v803_v16 = vmul.f32 %v699_v17, %v1771_v15  ;;  %v804_v33 = vmul.f32 %v699_v17, %v1772_v26 }
 0x2eb   : > { %867 = vst [vmem:[%s1503_s13 + $0x150] sm:$0xff] %v803_v16 }
 0x2ec   : > { %868 = vst [vmem:[%s1503_s13 + $0x158] sm:$0xff] %v804_v33 }
 0x2ef   : > { %v705_v58 = vpop.permute.xlu1 %704 }
 0x2f0   : > { %v805_v61 = vmul.f32 %v705_v58, %v1773_v59  ;;  %v806_v38 = vmul.f32 %v705_v58, %v1774_v43 }
 0x2f2   : > { %869 = vst [vmem:[%s1503_s13 + $0x160] sm:$0xff] %v805_v61 }
 0x2f3   : > { %870 = vst [vmem:[%s1503_s13 + $0x168] sm:$0xff] %v806_v38 }
 0x2f8   : > { %v718_v24 = vpop.permute.xlu2 %717 }
 0x2f9   : > { %v809_v60 = vmul.f32 %v718_v24, %v1775_v29  ;;  %v810_v10 = vmul.f32 %v718_v24, %v1776_v9 }
 0x2fb   : > { %873 = vst [vmem:[%s1503_s13 + $0x180] sm:$0xff] %v809_v60 }
 0x2fc   : > { %874 = vst [vmem:[%s1503_s13 + $0x188] sm:$0xff] %v810_v10 }
 0x2ff   : > { %v724_v52 = vpop.permute.xlu1 %723 }
 0x300   : > { %v811_v54 = vmul.f32 %v724_v52, %v1777_v11  ;;  %v812_v56 = vmul.f32 %v724_v52, %v1778_v44 }
 0x302   : > { %875 = vst [vmem:[%s1503_s13 + $0x190] sm:$0xff] %v811_v54 }
 0x303   : > { %876 = vst [vmem:[%s1503_s13 + $0x198] sm:$0xff] %v812_v56 }
 0x308   : > { %v730_v31 = vpop.permute.xlu2 %729 }
 0x309   : > { %v813_v53 = vmul.f32 %v730_v31, %v1779_v32  ;;  %v814_v50 = vmul.f32 %v730_v31, %v1780_v46 }
 0x30b   : > { %877 = vst [vmem:[%s1503_s13 + $0x1a0] sm:$0xff] %v813_v53 }
 0x30c   : > { %878 = vst [vmem:[%s1503_s13 + $0x1a8] sm:$0xff] %v814_v50 }
 0x30f   : > { %v736_v49 = vpop.permute.xlu1 %735 }
 0x310   : > { %v815_v39 = vmul.f32 %v736_v49, %v1781_v41  ;;  %v816_v62 = vmul.f32 %v736_v49, %v1782_v42 }
 0x312   : > { %879 = vst [vmem:[%s1503_s13 + $0x1b0] sm:$0xff] %v815_v39 }
 0x313   : > { %880 = vst [vmem:[%s1503_s13 + $0x1b8] sm:$0xff] %v816_v62 }
 0x318   : > { %v748_v12 = vpop.permute.xlu2 %747 }
 0x319   : > { %v819_v55 = vmul.f32 %v748_v12, %v1783_v30  ;;  %v820_v22 = vmul.f32 %v748_v12, %v1784_v25 }
 0x31b   : > { %883 = vst [vmem:[%s1503_s13 + $0x1d0] sm:$0xff] %v819_v55 }
 0x31c   : > { %884 = vst [vmem:[%s1503_s13 + $0x1d8] sm:$0xff] %v820_v22 }
 0x31f   : > { %v754_v19 = vpop.permute.xlu1 %753 }
 0x320   : > { %v821_v45 = vmul.f32 %v754_v19, %v1785_v28  ;;  %v822_v40 = vmul.f32 %v754_v19, %v1786_v23 }
 0x322   : > { %885 = vst [vmem:[%s1503_s13 + $0x1e0] sm:$0xff] %v821_v45 }
 0x323   : > { %886 = vst [vmem:[%s1503_s13 + $0x1e8] sm:$0xff] %v822_v40 }
 0x328   : > { %v760_v5 = vpop.permute.xlu2 %759 }
 0x329   : > { %v823_v63 = vmul.f32 %v760_v5, %v1787_v6  ;;  %v824_v3 = vmul.f32 %v760_v5, %v1788_v35 }
 0x32b   : > { %887 = vst [vmem:[%s1503_s13 + $0x1f0] sm:$0xff] %v823_v63 }
 0x32c   : > { %888 = vst [vmem:[%s1503_s13 + $0x1f8] sm:$0xff] %v824_v3 }
 0x32d PF: > { %s13_s12 = sadd.s32 1, %s1017_s12  }
 0x32e   : > { %p10_p4 = scmp.ge.s32.totalorder %s13_s12, 4  }
 0x330   :  { %12 = sbr.rel (!%p10_p4) target bundleno = 1 (0x1), region = 62 }

</bundles_post_ra>
